<compile_context>
chip_gen: v7x
topology: tpu7x:2x2x1
jax: 0.10.0
libtpu: 0.0.40
codegen_flags: <defaults>
</compile_context>

<pallas_src>
import jax
import jax.numpy as jnp
from jax.experimental import pallas as pl
from jax.experimental.pallas import tpu as pltpu


def _round_up(x: int, m: int) -> int:
    return ((x + m - 1) // m) * m


def _ptanh_kernel(x_ref, a_ref, b_ref, o_ref):
    # x_ref: (TR, TS) tile; a_ref/b_ref: (TR, 1) per-row scales.
    x = x_ref[...].astype(jnp.float32)
    a = a_ref[...].astype(jnp.float32)
    b = b_ref[...].astype(jnp.float32)
    o_ref[...] = (jnp.tanh(x * a) * b).astype(o_ref.dtype)


def ptanh(x_nchw, a, b, *, tr_target: int = 256, ts_target: int = 1024):
    """x_nchw: (N, C, H, W); a, b: (C, 1, 1) parameters (PyTorch convention)."""
    N, C, H, W = x_nchw.shape
    R, S = N * C, H * W
    dtype = x_nchw.dtype
    itemsize = jnp.dtype(dtype).itemsize

    # Flatten to a lane-dense 2-D slab and expand params per row.
    x2d = x_nchw.reshape(R, S)
    a_row = jnp.broadcast_to(a.reshape(1, C, 1), (N, C, 1)).reshape(R, 1).astype(dtype)
    b_row = jnp.broadcast_to(b.reshape(1, C, 1), (N, C, 1)).reshape(R, 1).astype(dtype)

    # Pad so blocks are (8, 128)-aligned and stores are unmasked. For common
    # shapes (S % 128 == 0, R % 8 == 0) this is a no-op.
    R_pad = _round_up(R, 8)
    S_pad = _round_up(S, 128)
    if (R_pad, S_pad) != (R, S):
        x2d = jnp.pad(x2d, ((0, R_pad - R), (0, S_pad - S)))
        a_row = jnp.pad(a_row, ((0, R_pad - R), (0, 0)))
        b_row = jnp.pad(b_row, ((0, R_pad - R), (0, 0)))

    # Tile sizes: multiples of (8, 128), clamped to the (padded) array and
    # sized so double-buffered x + out tiles stay in the low-MiB range.
    TR = min(tr_target, R_pad)
    TS = min(ts_target, S_pad)
    grid = (pl.cdiv(R_pad, TR), pl.cdiv(S_pad, TS))

    cost = pl.CostEstimate(
        flops=2 * R * S,
        transcendentals=R * S,
        bytes_accessed=(2 * R * S + 2 * R) * itemsize,
    )

    out2d = pl.pallas_call(
        _ptanh_kernel,
        out_shape=jax.ShapeDtypeStruct((R_pad, S_pad), dtype),
        grid=grid,
        in_specs=[
            pl.BlockSpec((TR, TS), lambda i, j: (i, j)),
            pl.BlockSpec((TR, 1), lambda i, j: (i, 0)),
            pl.BlockSpec((TR, 1), lambda i, j: (i, 0)),
        ],
        out_specs=pl.BlockSpec((TR, TS), lambda i, j: (i, j)),
        compiler_params=pltpu.CompilerParams(
            dimension_semantics=("parallel", "parallel"),
        ),
        cost_estimate=cost,
    )(x2d, a_row, b_row)

    if (R_pad, S_pad) != (R, S):
        out2d = out2d[:R, :S]
    return out2d.reshape(N, C, H, W)


if __name__ == "__main__":
    # Small shapes consistent with the module: batch=2, channels=4, spatial=16.
    N, C, H, W = 2, 4, 16, 16

    key = jax.random.PRNGKey(0)
    x = jax.random.normal(key, (N, C, H, W), dtype=jnp.float32)

    # Deterministic parameter init matching PTanh.__init__:
    #   a = full((C,1,1), 1.7159), b = full((C,1,1), 2/3)
    a = jnp.full((C, 1, 1), 1.7159, dtype=jnp.float32)
    b = jnp.full((C, 1, 1), 2.0 / 3.0, dtype=jnp.float32)

    out = ptanh(x, a, b)
    out = jax.block_until_ready(out)

    # Sanity check against pure-JAX reference of the PyTorch forward.
    ref = jnp.tanh(x * a[None]) * b[None]
    assert out.shape == x.shape
    assert jnp.allclose(out, ref, atol=1e-6, rtol=1e-6)

    # Extra check on a non-aligned shape to exercise the padding path.
    x2 = jax.random.normal(jax.random.PRNGKey(1), (3, C, 7, 7), dtype=jnp.float32)
    out2 = jax.block_until_ready(ptanh(x2, a, b))
    ref2 = jnp.tanh(x2 * a[None]) * b[None]
    assert jnp.allclose(out2, ref2, atol=1e-6, rtol=1e-6)

    print("KERNEL_OK")
</pallas_src>

<mosaic_0001>
module attributes {stable_mosaic.version = 11 : i64} {
  func.func @_ptanh_kernel(%arg0: i32, %arg1: i32, %arg2: memref<8x256xf32, #tpu.memory_space<vmem>>, %arg3: memref<8x1xf32, #tpu.memory_space<vmem>>, %arg4: memref<8x1xf32, #tpu.memory_space<vmem>>, %arg5: memref<8x256xf32, #tpu.memory_space<vmem>>) attributes {dimension_semantics = [#tpu.dimension_semantics<parallel>, #tpu.dimension_semantics<parallel>], iteration_bounds = array<i64: 1, 1>, scalar_prefetch = 0 : i64, scratch_operands = 0 : i64, tpu.core_type = #tpu.core_type<tc>, window_params = [{transform_indices = @transform_0, window_bounds = array<i64: 8, 256>}, {transform_indices = @transform_1, window_bounds = array<i64: 8, 1>}, {transform_indices = @transform_2, window_bounds = array<i64: 8, 1>}, {transform_indices = @transform_3, window_bounds = array<i64: 8, 256>}]} {
    %c0 = arith.constant 0 : index
    %c0_0 = arith.constant 0 : index
    %0 = vector.load %arg2[%c0, %c0_0] : memref<8x256xf32, #tpu.memory_space<vmem>>, vector<8x256xf32>
    %c0_1 = arith.constant 0 : index
    %c0_2 = arith.constant 0 : index
    %1 = vector.load %arg3[%c0_1, %c0_2] : memref<8x1xf32, #tpu.memory_space<vmem>>, vector<8x1xf32>
    %c0_3 = arith.constant 0 : index
    %c0_4 = arith.constant 0 : index
    %2 = vector.load %arg4[%c0_3, %c0_4] : memref<8x1xf32, #tpu.memory_space<vmem>>, vector<8x1xf32>
    %3 = vector.broadcast %1 : vector<8x1xf32> to vector<8x256xf32>
    %4 = arith.mulf %0, %3 : vector<8x256xf32>
    %5 = math.tanh %4 : vector<8x256xf32>
    %6 = vector.broadcast %2 : vector<8x1xf32> to vector<8x256xf32>
    %7 = arith.mulf %5, %6 : vector<8x256xf32>
    %c0_5 = arith.constant 0 : index
    %c0_6 = arith.constant 0 : index
    %8 = vector.load %arg5[%c0_5, %c0_6] : memref<8x256xf32, #tpu.memory_space<vmem>>, vector<8x256xf32>
    tpu.vector_store %arg5[%c0_5, %c0_6], %7 {strides = array<i32>} : memref<8x256xf32, #tpu.memory_space<vmem>>, vector<8x256xf32>,
    return
  }
  func.func @transform_0(%arg0: i32, %arg1: i32) -> (i32, i32) {
    %c0_i32 = arith.constant 0 : i32
    return %arg0, %arg1 : i32, i32
  }
  func.func @transform_1(%arg0: i32, %arg1: i32) -> (i32, i32) {
    %c0_i32 = arith.constant 0 : i32
    %c0_i32_0 = arith.constant 0 : i32
    return %arg0, %c0_i32 : i32, i32
  }
  func.func @transform_2(%arg0: i32, %arg1: i32) -> (i32, i32) {
    %c0_i32 = arith.constant 0 : i32
    %c0_i32_0 = arith.constant 0 : i32
    return %arg0, %c0_i32 : i32, i32
  }
  func.func @transform_3(%arg0: i32, %arg1: i32) -> (i32, i32) {
    %c0_i32 = arith.constant 0 : i32
    return %arg0, %arg1 : i32, i32
  }
}

</mosaic_0001>

<bundles_post_ra>
// kernel: tpu_custom_call.1
= control target key start
LH: loop header
LB: loop body
LE: loop exit
PB: predicated region body
PF: predicated region fallthrough
CT: control target
= control target key end

     0   :  { %s128_s0 = inlined_call_operand.vmem [shape: f32[8,256], index: 0, kind: input, shape index: {}]   ;;  %s129_s1 = inlined_call_operand.vmem [shape: f32[8,1], index: 1, kind: input, shape index: {}]   ;;  %s130_s2 = inlined_call_operand.vmem [shape: f32[8,1], index: 2, kind: input, shape index: {}]   ;;  %s131_s3 = inlined_call_operand.hbm [shape: f32[8,256], index: 3, kind: output, shape index: {}]  }
   0x1   :  { %v17_v0 = vld [vmem:[%s129_s1] sm:$0xff] }
   0x2   :  { %8 = vsyncpa [#allocation3], 0  ;;  %v82_v1 = vmov 0   ;;  %v18_v2 = vld [vmem:[%s130_s2] sm:$0xff]  ;;  %v16_v4 = vld [vmem:[%s128_s0 + $0x8] sm:$0xff]  ;;  %s83_s1 = smov [#allocation2]  }
   0x3   :  { %53 = vset.pattern.permute.xlu0 %v82_v1  ;;  %v15_v3 = vld [vmem:[%s128_s0] sm:$0xff]  ;;  %s43_s20 = sshll.u32 %s83_s1, 4  ;;  %s44_s20 = int_to_ptr.vmem [resolvable:$true] %s43_s20 }
   0x4   :  { %21 = vperm.xlu0 %53, %v17_v0   ;;  %s58_s2 = scalar_lea.vmem %s44_s20, 256  ;;  %p63_p1 = scmp.lt.s32.totalorder %s44_s20, %s44_s20 }
   0x5   :  { %p59_p0 = scmp.ne.s32.totalorder %s44_s20, %s58_s2  ;;  %p64_p2 = scmp.lt.s32.totalorder %s58_s2, %s58_s2 }
   0x7   :  { %p65_p3 = por %p64_p2, %p63_p1 }
   0x8   :  { %30 = vperm.xlu0 %53, %v18_v2  }
   0x9   :  { %p66_p4 = pnand %p65_p3, %p59_p0 }
  0x83   :  { %v22_v5 = vpop.permute.xlu0 %21 }
  0x84   :  { %v24_v6 = vmul.f32 %v22_v5, %v15_v3  ;;  %v25_v7 = vmul.f32 %v22_v5, %v16_v4 }
  0x86   :  { %54 = vtanh.f32 %v24_v6 }
  0x87   :  { %56 = vtanh.f32 %v25_v7  ;;  %v31_v9 = vpop.permute.xlu0 %30 }
  0x90   :  { %v55_v8 = vpop.eup %54 }
  0x91   :  { %v57_v10 = vpop.eup %56  ;;  %v33_v11 = vmul.f32 %v55_v8, %v31_v9 }
  0x92   :  { %v34_v12 = vmul.f32 %v57_v10, %v31_v9 }
  0x93   :  { %35 = vst [vmem:[#allocation2] sm:$0xff] %v33_v11 }
  0x94   :  { %36 = vst [vmem:[#allocation2 + $0x8] sm:$0xff] %v34_v12 }
  0x95   :  { %69 = shalt.err (!%p66_p4)
}
  0x96   :  { %s70_s22 = scalar_lea.hbm %s131_s3, 256 }
  0x97   :  { %p71_p5 = scmp.ne.s32.totalorder %s131_s3, %s70_s22  ;;  %p74_p6 = scmp.lt.u32.totalorder %s70_s22, %s131_s3 }
  0x99   :  { %p76_p7 = pnand %p74_p6, %p71_p5 }
  0x9b   :  { %79 = shalt.err (!%p76_p7)
}
  0x9c   :  { %46 = dma.vmem_to_hbm [thread:$0]  %s44_s20, 256, %s131_s3, [#allocation3]  }
  0x9d   :  { %80 = dma.done.wait [#allocation3], 256  }
  0x9e   :  { %81 = vsyncadd [#allocation3], 4294967040 }
  0x9f   :  { %50 = vsyncpa [#allocation3], 1 }

</bundles_post_ra>
